<compile_context>
chip_gen: v6e
topology: v6e:2x2x1
jax: 0.10.0
libtpu: 0.0.40
codegen_flags: <defaults>
</compile_context>

<pallas_src>
import functools

import jax
import jax.numpy as jnp
from jax.experimental import pallas as pl
from jax.experimental.pallas import tpu as pltpu

EPS = 1e-6


def _pow_int(x, n):
    """x ** n for a static positive integer n via square-and-multiply (VPU only)."""
    result = None
    base = x
    while n > 0:
        if n & 1:
            result = base if result is None else result * base
        n >>= 1
        if n:
            base = base * base
    return result


def _gem_kernel_static_int_p(x_ref, o_ref, *, p_int, inv_p):
    # x_ref: VMEM tile (bm, L)   rows = flattened (N*C), lanes = H*W
    # o_ref: VMEM tile (bm, 1)
    # Per-element power is pure VPU multiplies; only the final root
    # (bm elements) touches the EUP.
    x = x_ref[...].astype(jnp.float32)
    xc = jnp.maximum(x, EPS)                       # clamp(min=eps); xc > 0
    xp = _pow_int(xc, p_int)
    m = jnp.mean(xp, axis=-1, keepdims=True)       # avg_pool2d over full H*W
    if p_int == 1:
        root = m
    else:
        # m >= eps**p (may flush to 0 for large p; exp(-inf)=0 matches m**(1/p)).
        root = jnp.exp(jnp.log(m) * inv_p)
    o_ref[...] = root.astype(o_ref.dtype)


def _gem_kernel_traced_p(p_ref, x_ref, o_ref):
    # p_ref: SMEM scalar parameter (shape (1,)) — runtime, non-integer p.
    p = p_ref[0]
    x = x_ref[...].astype(jnp.float32)
    xc = jnp.maximum(x, EPS)
    # x**p with a traced exponent: exp(p * log(x)) (safe since xc >= eps).
    xp = jnp.exp(p * jnp.log(xc))
    m = jnp.mean(xp, axis=-1, keepdims=True)
    o_ref[...] = jnp.exp(jnp.log(m) / p).astype(o_ref.dtype)


def _round_up(x, m):
    return ((x + m - 1) // m) * m


def _choose_bm(B, L, *, f32_block_bytes, min_grid_steps):
    """Rows per block (multiple of 8).

    Sized purely by the f32 working-set budget of a block (no fixed row cap),
    then capped so the grid has at least `min_grid_steps` steps when B allows
    (pipelining + v7x megacore sharding), and never below 8 rows.
    """
    bm = max(1, f32_block_bytes // (L * 4))
    bm = min(bm, pl.cdiv(B, min_grid_steps))
    bm = max(8, (bm // 8) * 8)
    bm = min(bm, _round_up(B, 8))
    return bm


def _concrete_p(p_param):
    """Return float(p_param) if it is concrete, else None (e.g. under jit)."""
    try:
        return float(jnp.asarray(p_param).reshape(-1)[0])
    except (jax.errors.ConcretizationTypeError, TypeError):
        return None


def gem_pooling(x, p_param, *, static_p=None,
                f32_block_bytes=4 * 1024 * 1024, min_grid_steps=4):
    """GeM pooling. x: (N, C, H, W), p_param: (1,) float -> (N, C, 1, 1)."""
    N, C, H, W = x.shape
    B = N * C
    L = H * W
    x2 = x.reshape(B, L)                 # free view: NCHW rows are contiguous

    bm = _choose_bm(B, L, f32_block_bytes=f32_block_bytes,
                    min_grid_steps=min_grid_steps)
    grid = (pl.cdiv(B, bm),)             # ragged last block handled by Pallas

    # ---- host-side dispatch between static-int-p and traced-p paths -------
    p_concrete = _concrete_p(p_param)
    p_static = None
    if static_p is not None:
        p_static = float(static_p)
        if p_concrete is not None and abs(p_concrete - p_static) > 1e-6:
            raise ValueError(
                f"static_p={p_static} disagrees with p_param={p_concrete}")
    elif p_concrete is not None:
        p_static = p_concrete
    use_static = (
        p_static is not None
        and float(p_static) == int(round(p_static))
        and 1 <= int(round(p_static)) <= 16
    )

    in_block_bytes = bm * L * x.dtype.itemsize
    f32_block = bm * L * 4
    vmem_limit = 2 * in_block_bytes + 4 * f32_block + (2 << 20)
    vmem_limit = max(vmem_limit, 32 << 20)
    vmem_limit = min(vmem_limit, 128 << 20)

    cost = pl.CostEstimate(
        flops=(int(round(p_static)) + 2) * B * L if use_static else 4 * B * L,
        transcendentals=(2 * B if use_static else 2 * B * L + 2 * B),
        bytes_accessed=x.dtype.itemsize * B * L + x.dtype.itemsize * B,
    )
    cparams = pltpu.CompilerParams(
        dimension_semantics=("parallel",),   # shards grid across TCs on v7x
        vmem_limit_bytes=vmem_limit,
    )

    out_shape = jax.ShapeDtypeStruct((B, 1), x.dtype)
    x_spec = pl.BlockSpec((bm, L), lambda i: (i, 0))
    o_spec = pl.BlockSpec((bm, 1), lambda i: (i, 0))

    if use_static:
        p_int = int(round(p_static))
        kernel = functools.partial(_gem_kernel_static_int_p,
                                   p_int=p_int, inv_p=1.0 / float(p_int))
        out = pl.pallas_call(
            kernel,
            out_shape=out_shape,
            grid_spec=pltpu.PrefetchScalarGridSpec(
                num_scalar_prefetch=0,
                grid=grid,
                in_specs=[x_spec],
                out_specs=o_spec,
            ),
            compiler_params=cparams,
            cost_estimate=cost,
        )(x2)
    else:
        out = pl.pallas_call(
            _gem_kernel_traced_p,
            out_shape=out_shape,
            grid_spec=pltpu.PrefetchScalarGridSpec(
                num_scalar_prefetch=0,
                grid=grid,
                in_specs=[
                    pl.BlockSpec(memory_space=pltpu.MemorySpace.SMEM),  # p
                    x_spec,
                ],
                out_specs=o_spec,
            ),
            compiler_params=cparams,
            cost_estimate=cost,
        )(jnp.asarray(p_param).reshape(1).astype(jnp.float32), x2)

    return out.reshape(N, C, 1, 1)


def _reference(x, p):
    return jnp.mean(jnp.maximum(x, EPS) ** p, axis=(2, 3), keepdims=True) ** (1.0 / p)


if __name__ == "__main__":
    key = jax.random.PRNGKey(0)

    # Small demo shapes consistent with the module.
    N, C, H, W = 2, 4, 16, 16
    x = jax.random.uniform(key, (N, C, H, W), dtype=jnp.float32)

    # nn.Parameter(torch.ones(1) * 3.0)
    p_param = jnp.ones((1,), dtype=jnp.float32) * 3.0
    ref = _reference(x, p_param[0])

    # 1) default path: p is concrete & integral -> static VPU power path.
    y = gem_pooling(x, p_param)
    jax.block_until_ready(y)
    assert y.shape == (N, C, 1, 1)
    assert jnp.allclose(y, ref, rtol=1e-5, atol=1e-6)

    # 2) explicit static_p (checked against the concrete p_param).
    y_fast = gem_pooling(x, p_param, static_p=3.0)
    jax.block_until_ready(y_fast)
    assert jnp.allclose(y_fast, ref, rtol=1e-5, atol=1e-6)

    # 3) traced-p kernel (non-integer learned p -> exp(p*log(x)) path).
    p_frac = jnp.ones((1,), dtype=jnp.float32) * 2.5
    y_frac = gem_pooling(x, p_frac)
    jax.block_until_ready(y_frac)
    ref_frac = _reference(x, p_frac[0])
    assert jnp.allclose(y_frac, ref_frac, rtol=1e-5, atol=1e-6)

    # 4) multi-block grid + ragged last block (B=12, bm=8 -> grid=(2,), no pad).
    N2, C2 = 3, 4
    x2 = jax.random.uniform(jax.random.PRNGKey(1), (N2, C2, H, W), dtype=jnp.float32)
    y2 = gem_pooling(x2, p_param)
    jax.block_until_ready(y2)
    ref2 = _reference(x2, p_param[0])
    assert y2.shape == (N2, C2, 1, 1)
    assert jnp.allclose(y2, ref2, rtol=1e-5, atol=1e-6)

    print("KERNEL_OK")
</pallas_src>

<mosaic_0001>
module attributes {stable_mosaic.version = 11 : i64} {
  func.func @_gem_kernel_static_int_p(%arg0: i32, %arg1: memref<8x256xf32, #tpu.memory_space<vmem>>, %arg2: memref<8x1xf32, #tpu.memory_space<vmem>>) attributes {dimension_semantics = [#tpu.dimension_semantics<parallel>], iteration_bounds = array<i64: 1>, scalar_prefetch = 0 : i64, scratch_operands = 0 : i64, tpu.core_type = #tpu.core_type<tc>, window_params = [{transform_indices = @transform_0, window_bounds = array<i64: 8, 256>}, {transform_indices = @transform_1, window_bounds = array<i64: 8, 1>}]} {
    %c0 = arith.constant 0 : index
    %c0_0 = arith.constant 0 : index
    %0 = vector.load %arg1[%c0, %c0_0] : memref<8x256xf32, #tpu.memory_space<vmem>>, vector<8x256xf32>
    %cst = arith.constant 9.99999997E-7 : f32
    %1 = vector.broadcast %cst : f32 to vector<8x256xf32>
    %2 = arith.maximumf %0, %1 : vector<8x256xf32>
    %3 = arith.mulf %2, %2 : vector<8x256xf32>
    %4 = arith.mulf %2, %3 : vector<8x256xf32>
    %cst_1 = arith.constant dense<0.000000e+00> : vector<8xf32>
    %5 = vector.multi_reduction <add>, %4, %cst_1 [1] : vector<8x256xf32> to vector<8xf32>
    %6 = vector.shape_cast %5 : vector<8xf32> to vector<8x1xf32>
    %cst_2 = arith.constant 2.560000e+02 : f32
    %7 = vector.broadcast %cst_2 : f32 to vector<8x1xf32>
    %8 = arith.divf %6, %7 : vector<8x1xf32>
    %9 = math.log %8 : vector<8x1xf32>
    %cst_3 = arith.constant 0.333333343 : f32
    %10 = vector.broadcast %cst_3 : f32 to vector<8x1xf32>
    %11 = arith.mulf %9, %10 : vector<8x1xf32>
    %12 = math.exp %11 : vector<8x1xf32>
    %c0_4 = arith.constant 0 : index
    %c0_5 = arith.constant 0 : index
    %13 = vector.load %arg2[%c0_4, %c0_5] : memref<8x1xf32, #tpu.memory_space<vmem>>, vector<8x1xf32>
    tpu.vector_store %arg2[%c0_4, %c0_5], %12 {strides = array<i32>} : memref<8x1xf32, #tpu.memory_space<vmem>>, vector<8x1xf32>,
    return
  }
  func.func @transform_0(%arg0: i32) -> (i32, i32) {
    %c0_i32 = arith.constant 0 : i32
    %c0_i32_0 = arith.constant 0 : i32
    return %arg0, %c0_i32 : i32, i32
  }
  func.func @transform_1(%arg0: i32) -> (i32, i32) {
    %c0_i32 = arith.constant 0 : i32
    %c0_i32_0 = arith.constant 0 : i32
    return %arg0, %c0_i32 : i32, i32
  }
}

</mosaic_0001>

<bundles_post_ra>
// kernel: tpu_custom_call.1
= control target key start
LH: loop header
LB: loop body
LE: loop exit
PB: predicated region body
PF: predicated region fallthrough
CT: control target
= control target key end

     0   :  { %6 = vsyncpa [#allocation3], 0  ;;  %s72_s6 = smov [#allocation2]   ;;  %s89_s0 = inlined_call_operand.hbm [shape: f32[8,256], index: 0, kind: input, shape index: {}]   ;;  %s90_s1 = inlined_call_operand.vmem [shape: f32[8,1], index: 1, kind: output, shape index: {}]  }
   0x1   :  { %s13_s7 = sshll.u32 %s72_s6, 4  ;;  %s14_s7 = int_to_ptr.vmem [resolvable:$true] %s13_s7 }
   0x2   :  { %s58_s8 = scalar_lea.vmem %s14_s7, 256  ;;  %p63_p1 = scmp.lt.s32.totalorder %s14_s7, %s14_s7 }
   0x3   :  { %p59_p0 = scmp.ne.s32.totalorder %s14_s7, %s58_s8  ;;  %p64_p2 = scmp.lt.s32.totalorder %s58_s8, %s58_s8 }
   0x5   :  { %p65_p3 = por %p64_p2, %p63_p1 }
   0x7   :  { %p66_p4 = pnand %p65_p3, %p59_p0 }
   0x9   :  { %69 = shalt.err (!%p66_p4)
}
   0xa   :  { %16 = dma.hbm_to_vmem [thread:$0]  %s89_s0, 256, %s14_s7, [#allocation3]  }
   0xb   :  { %70 = dma.done.wait [#allocation3], 256  }
   0xc   :  { %71 = vsyncadd [#allocation3], 4294967040  ;;  %v20_v0 = vld [vmem:[#allocation2] sm:$0xff]  ;;  %v21_v1 = vld [vmem:[#allocation2 + $0x8] sm:$0xff]  ;;  %vm38_vm0 = vcmask 7168  }
   0xd   :  { %v22_v2 = vmax.f32 %v20_v0, 1e-06  ;;  %v23_v3 = vmax.f32 %v21_v1, 1e-06 }
   0xf   :  { %v24_v4 = vmul.f32 %v22_v2, %v22_v2  ;;  %v25_v5 = vmul.f32 %v23_v3, %v23_v3 }
  0x11   :  { %v26_v6 = vmul.f32 %v24_v4, %v22_v2  ;;  %v27_v7 = vmul.f32 %v25_v5, %v23_v3 }
  0x13   :  { %v28_v8 = vadd.f32 %v27_v7, %v26_v6 }
  0x15   :  { %29 = vadd.xlane.f32.xlu0 %v28_v8 }
  0x9e   :  { %v30_v9 = vpop.xlane.xlu0 %29 }
  0x9f   :  { %v32_v10 = vmul.f32 0.00390625, %v30_v9 }
  0xa1   :  { %46 = vlog2.f32 %v32_v10 }
  0xae   :  { %v47_v11 = vpop.eup %46 }
  0xaf   :  { %v34_v12 = vmul.f32 0.6931472, %v47_v11 }
  0xb1   :  { %v35_v13 = vmul.f32 0.33333334, %v34_v12 }
  0xb3   :  { %v36_v14 = vmul.f32 1.442695, %v35_v13 }
  0xb5   :  { %48 = vpow2.f32 %v36_v14 }
  0xc2   :  { %v49_v15 = vpop.eup %48 }
  0xc3   :  { %39 = vst.msk [vmem:[%s90_s1] sm:$0xff] %vm38_vm0, %v49_v15 }
  0xc4   :  { %44 = vsyncpa [#allocation3], 1 }

</bundles_post_ra>
